<compile_context>
chip_gen: v6e
topology: v6e:2x2x1
jax: 0.10.0
libtpu: 0.0.40
codegen_flags: <defaults>
</compile_context>

<pallas_src>
import jax
import jax.numpy as jnp
from jax import lax
from jax.experimental import pallas as pl
from jax.experimental.pallas import tpu as pltpu


_NEG_BIG = -1.0e30   # finite "-inf": masks positives/padding out of negatives
_POS_BIG = 1.0e30    # finite "+inf": masks negatives/padding out of the min
                     # (same result as PyTorch's +/-9999999 additive trick)


def _round_up(x, m):
    return (x + m - 1) // m * m


def _vmem_capacity_bytes():
    """Per-core VMEM capacity; conservative fallback if the query fails."""
    try:
        info = pltpu.get_tpu_info()
        cap = getattr(info, "vmem_capacity_bytes", None)
        if cap:
            return int(cap)
    except Exception:
        pass
    return 64 * 1024 * 1024   # v7x per-TensorCore VMEM (smallest generation)


def _choose_tiles(n, d, itemsize, vmem_cap):
    """Pick (n_pad, row tile TM, k-column tile TK)."""
    if n <= 256:
        # Single tile; block shapes equal full (padded) dims, so no (8,128)
        # divisibility issues and no wasted compute beyond the next multiple
        # of 8 rows.
        n_pad = _round_up(n, 8)
        return n_pad, n_pad, n_pad
    # Pad to a multiple of 256 so the number of 128-row tiles is even: the
    # "parallel" row axis is what v7x shards across its two TensorCores.
    n_pad = _round_up(n, 256)
    tm = 128
    budget = (vmem_cap * 5) // 8            # headroom for Pallas internals
    tk = 256
    for cand in (2048, 1024, 512, 256):
        if n_pad % cand:
            continue
        need = 2 * (tm + cand) * d * itemsize + 6 * cand * tm * 4 + (2 << 20)
        if need <= budget:
            tk = cand
            break
    # TODO(synk): for extremely large feature dims D the (tile, D) slabs would
    # also need a D-axis (contraction) grid split; not needed for re-ID sizes.
    return n_pad, tm, tk


def _make_kernel(T, n_valid, tk, bf16_matmul):
    inv_T = 1.0 / float(T)

    def kernel(q_ref, k_ref, labq_ref, labk_ref, loss_ref, hp_sc, m_sc, s_sc):
        j = pl.program_id(1)

        @pl.when(j == 0)
        def _init():
            hp_sc[...] = jnp.full_like(hp_sc, _POS_BIG)   # running min positive
            m_sc[...] = jnp.full_like(m_sc, _NEG_BIG)     # running max negative
            s_sc[...] = jnp.zeros_like(s_sc)              # running sum exp(neg-m)

        q = q_ref[...]                                    # [TM, D]
        k = k_ref[...]                                    # [TK, D]
        if bf16_matmul and q.dtype == jnp.float32:
            # Fast MXU path on v6e/v7x (f32 matmul is a slow multi-pass there);
            # accumulation stays f32 below.
            q = q.astype(jnp.bfloat16)
            k = k.astype(jnp.bfloat16)

        # sim[c, r] = <k_c, q_r>; contract over D of both operands (no
        # transposes / relayouts), f32 accumulation.  The k-rows sit on
        # sublanes and the q-rows on lanes, so the per-row results of the
        # axis-0 reductions below are naturally lane-dense.
        sim = lax.dot_general(k, q, (((1,), (1,)), ((), ())),
                              preferred_element_type=jnp.float32)  # [TK, TM]
        if T != 1.0:
            # Scale the f32 sim (exact parity with the reference; O(TK*TM) VPU).
            sim = sim * inv_T

        lab_q = labq_ref[...]                             # [1, TM] int32
        lab_k = labk_ref[...]                             # [TK, 1] int32
        eq = lab_k == lab_q                               # [TK, TM] bool

        # Columns past the true batch size (padding) are neither positives nor
        # negatives.  n_valid / tk are static Python ints.
        col = j * tk + lax.broadcasted_iota(jnp.int32, (tk, 1), 0)
        valid = col < n_valid                             # [TK, 1] bool

        # --- hardest positive: running min over valid positives -------------
        pos_mask = jnp.logical_and(eq, valid)
        hp_sc[...] = jnp.minimum(
            hp_sc[...],
            jnp.min(jnp.where(pos_mask, sim, _POS_BIG), axis=0, keepdims=True))

        # --- negatives: online (rescaled) logsumexp accumulation ------------
        neg_mask = jnp.logical_and(jnp.logical_not(eq), valid)
        neg = jnp.where(neg_mask, sim, _NEG_BIG)
        m_old = m_sc[...]
        m_new = jnp.maximum(m_old, jnp.max(neg, axis=0, keepdims=True))
        # Extra where handles columns with no negatives so far (m_new == -BIG),
        # where exp(neg - m_new) would otherwise evaluate to exp(0) == 1.
        p = jnp.where(neg_mask, jnp.exp(neg - m_new), 0.0)
        s_sc[...] = (s_sc[...] * jnp.exp(m_old - m_new)
                     + jnp.sum(p, axis=0, keepdims=True))
        m_sc[...] = m_new

        @pl.when(j == pl.num_programs(1) - 1)
        def _finalize():
            hp = hp_sc[...]                               # [1, TM] (already /T)
            m_fin = jnp.maximum(m_sc[...], hp)            # hp is finite -> safe
            denom = (jnp.exp(hp - m_fin)
                     + s_sc[...] * jnp.exp(m_sc[...] - m_fin))
            lse = m_fin + jnp.log(denom)
            # Lane-dense per-row losses for this row tile.
            loss_ref[...] = jnp.reshape(lse - hp, loss_ref.shape)

    return kernel


def view_contrastive_loss(q, k, label, num_instance=4, T=1.0,
                          bf16_matmul=False):
    """Pallas TPU implementation of ViewContrastiveLoss.forward.

    q, k:   [N, D] float arrays (f32 or bf16)
    label:  [N]    integer labels
    Returns a scalar f32 loss.
    """
    del num_instance  # only describes the batch layout in the PyTorch module
    N, D = q.shape
    assert k.shape == q.shape, "q and k must both be [N, D]"

    mxu_itemsize = 2 if (bf16_matmul or q.dtype == jnp.bfloat16) else \
        jnp.dtype(q.dtype).itemsize
    vmem_cap = _vmem_capacity_bytes()
    N_pad, TM, TK = _choose_tiles(N, D, mxu_itemsize, vmem_cap)
    G, GK = N_pad // TM, N_pad // TK

    label = jnp.asarray(label).reshape(-1).astype(jnp.int32)
    if N_pad != N:
        pad = N_pad - N
        q = jnp.pad(q, ((0, pad), (0, 0)))
        k = jnp.pad(k, ((0, pad), (0, 0)))
        label = jnp.pad(label, (0, pad), constant_values=-1)  # sentinel rows
    lab_row = label.reshape(1, N_pad)    # q-row labels (lane-dense tiles)
    lab_col = label.reshape(N_pad, 1)    # k-row labels (sublane tiles)

    # Per-core VMEM accounting: double-buffered q/k tiles and label tiles,
    # live f32 [TK, TM] temporaries of the masked online-LSE, scratch, output.
    q_itemsize = jnp.dtype(q.dtype).itemsize
    vmem_est = (2 * (TM + TK) * D * q_itemsize
                + 6 * TK * TM * 4
                + 4 * (TM + TK) * 4
                + 4 * TM * 4
                + (1 << 20))
    # Always set the limit (v5e's scoped default is only 16 MiB); cap with
    # headroom below this generation's physical VMEM.
    vmem_limit = int(min(max(2 * vmem_est, 32 * 1024 * 1024),
                         vmem_cap * 7 // 8))

    cost = pl.CostEstimate(
        flops=2 * N_pad * N_pad * D,
        transcendentals=N_pad * N_pad + 4 * N_pad,
        bytes_accessed=(G + 1) * N_pad * D * q_itemsize + 12 * N_pad)

    grid_spec = pltpu.PrefetchScalarGridSpec(
        num_scalar_prefetch=0,
        grid=(G, GK),
        in_specs=[
            pl.BlockSpec((TM, D), lambda i, j: (i, 0)),   # q row tile
            pl.BlockSpec((TK, D), lambda i, j: (j, 0)),   # k column tile
            pl.BlockSpec((1, TM), lambda i, j: (0, i)),   # labels of q rows
            pl.BlockSpec((TK, 1), lambda i, j: (j, 0)),   # labels of k rows
        ],
        out_specs=pl.BlockSpec((1, 1, TM), lambda i, j: (i, 0, 0)),
        scratch_shapes=[pltpu.VMEM((1, TM), jnp.float32)] * 3,  # hp, m, s
    )

    rows = pl.pallas_call(
        _make_kernel(T, N, TK, bf16_matmul),
        grid_spec=grid_spec,
        out_shape=jax.ShapeDtypeStruct((G, 1, TM), jnp.float32),
        compiler_params=pltpu.CompilerParams(
            dimension_semantics=("parallel", "arbitrary"),
            vmem_limit_bytes=vmem_limit),
        cost_estimate=cost,
    )(q, k, lab_row, lab_col)

    # Drop padded rows, then take the mean (tiny wrapper reduction).
    return jnp.mean(rows.reshape(-1)[:N])


def _reference_loss(q, k, label, T=1.0):
    """Plain-JAX reference mirroring the PyTorch math (for sanity check)."""
    q = q.astype(jnp.float32)
    k = k.astype(jnp.float32)
    sim = q @ k.T
    eq = label[:, None] == label[None, :]
    hard_p = jnp.min(jnp.where(eq, sim, _POS_BIG), axis=1, keepdims=True)
    scaled_sim = sim / T
    scaled_hp = hard_p / T
    neg = jnp.where(eq, _NEG_BIG, scaled_sim)
    m = jnp.maximum(scaled_hp, jnp.max(neg, axis=1, keepdims=True))
    denom = jnp.exp(scaled_hp - m) + jnp.sum(jnp.exp(neg - m), axis=1,
                                             keepdims=True)
    lse = m + jnp.log(denom)
    return jnp.mean(lse - scaled_hp)


if __name__ == "__main__":
    # Case 1: tiny batch consistent with the module defaults
    # (2 identities x num_instance=4, hidden=32).
    N, D, num_instance, T = 8, 32, 4, 1.0
    kq, kk = jax.random.split(jax.random.PRNGKey(0))
    q = jax.random.normal(kq, (N, D), dtype=jnp.float32)
    k = jax.random.normal(kk, (N, D), dtype=jnp.float32)
    label = jnp.repeat(jnp.arange(N // num_instance, dtype=jnp.int32),
                       num_instance)
    loss = jax.block_until_ready(
        view_contrastive_loss(q, k, label, num_instance=num_instance, T=T))
    ref = jax.block_until_ready(_reference_loss(q, k, label, T=T))
    assert jnp.allclose(loss, ref, rtol=1e-4, atol=1e-4), (loss, ref)

    # Case 2: non-tile-multiple batch with temperature — exercises padding with
    # masked columns, the multi-tile grid and the online (column-tiled) LSE.
    N2, D2, ni2, T2 = 520, 32, 4, 0.5
    kq2, kk2 = jax.random.split(jax.random.PRNGKey(1))
    q2 = jax.random.normal(kq2, (N2, D2), dtype=jnp.float32)
    k2 = jax.random.normal(kk2, (N2, D2), dtype=jnp.float32)
    label2 = jnp.repeat(jnp.arange(N2 // ni2, dtype=jnp.int32), ni2)
    loss2 = jax.block_until_ready(
        view_contrastive_loss(q2, k2, label2, num_instance=ni2, T=T2))
    ref2 = jax.block_until_ready(_reference_loss(q2, k2, label2, T=T2))
    assert jnp.allclose(loss2, ref2, rtol=1e-4, atol=1e-4), (loss2, ref2)

    print("KERNEL_OK")
</pallas_src>

<mosaic_0001>
module attributes {stable_mosaic.version = 11 : i64} {
  func.func @kernel(%arg0: i32, %arg1: i32, %arg2: memref<8x32xf32, #tpu.memory_space<vmem>>, %arg3: memref<8x32xf32, #tpu.memory_space<vmem>>, %arg4: memref<1x8xi32, #tpu.memory_space<vmem>>, %arg5: memref<8x1xi32, #tpu.memory_space<vmem>>, %arg6: memref<1x1x8xf32, #tpu.memory_space<vmem>>, %arg7: memref<1x8xf32, #tpu.memory_space<vmem>>, %arg8: memref<1x8xf32, #tpu.memory_space<vmem>>, %arg9: memref<1x8xf32, #tpu.memory_space<vmem>>) attributes {dimension_semantics = [#tpu.dimension_semantics<parallel>, #tpu.dimension_semantics<arbitrary>], iteration_bounds = array<i64: 1, 1>, scalar_prefetch = 0 : i64, scratch_operands = 3 : i64, tpu.core_type = #tpu.core_type<tc>, window_params = [{transform_indices = @transform_0, window_bounds = array<i64: 8, 32>}, {transform_indices = @transform_1, window_bounds = array<i64: 8, 32>}, {transform_indices = @transform_2, window_bounds = array<i64: 1, 8>}, {transform_indices = @transform_3, window_bounds = array<i64: 8, 1>}, {transform_indices = @transform_4, window_bounds = array<i64: 1, 1, 8>}]} {
    %c0_i32 = arith.constant 0 : i32
    %0 = arith.cmpi eq, %arg1, %c0_i32 : i32
    %1 = arith.extui %0 : i1 to i32
    %c0_i32_0 = arith.constant 0 : i32
    %2 = arith.cmpi ne, %1, %c0_i32_0 : i32
    scf.if %2 {
      %cst_30 = arith.constant 1.000000e+30 : f32
      %52 = vector.broadcast %cst_30 : f32 to vector<1x8xf32>
      %c0_31 = arith.constant 0 : index
      %c0_32 = arith.constant 0 : index
      %53 = vector.load %arg7[%c0_31, %c0_32] : memref<1x8xf32, #tpu.memory_space<vmem>>, vector<1x8xf32>
      tpu.vector_store %arg7[%c0_31, %c0_32], %52 {strides = array<i32>} : memref<1x8xf32, #tpu.memory_space<vmem>>, vector<1x8xf32>,
      %cst_33 = arith.constant -1.000000e+30 : f32
      %54 = vector.broadcast %cst_33 : f32 to vector<1x8xf32>
      %c0_34 = arith.constant 0 : index
      %c0_35 = arith.constant 0 : index
      %55 = vector.load %arg8[%c0_34, %c0_35] : memref<1x8xf32, #tpu.memory_space<vmem>>, vector<1x8xf32>
      tpu.vector_store %arg8[%c0_34, %c0_35], %54 {strides = array<i32>} : memref<1x8xf32, #tpu.memory_space<vmem>>, vector<1x8xf32>,
      %cst_36 = arith.constant 0.000000e+00 : f32
      %56 = vector.broadcast %cst_36 : f32 to vector<1x8xf32>
      %c0_37 = arith.constant 0 : index
      %c0_38 = arith.constant 0 : index
      %57 = vector.load %arg9[%c0_37, %c0_38] : memref<1x8xf32, #tpu.memory_space<vmem>>, vector<1x8xf32>
      tpu.vector_store %arg9[%c0_37, %c0_38], %56 {strides = array<i32>} : memref<1x8xf32, #tpu.memory_space<vmem>>, vector<1x8xf32>,
    } else {
    }
    %c0 = arith.constant 0 : index
    %c0_1 = arith.constant 0 : index
    %3 = vector.load %arg2[%c0, %c0_1] : memref<8x32xf32, #tpu.memory_space<vmem>>, vector<8x32xf32>
    %c0_2 = arith.constant 0 : index
    %c0_3 = arith.constant 0 : index
    %4 = vector.load %arg3[%c0_2, %c0_3] : memref<8x32xf32, #tpu.memory_space<vmem>>, vector<8x32xf32>
    %cst = arith.constant dense<0.000000e+00> : vector<8x8xf32>
    %5 = tpu.matmul %4, %3, %cst {dimension_numbers = #tpu.dot_dimension_numbers<[1], [1], [0], [0], [0, 0, 1, 0], [], []>} : vector<8x32xf32>, vector<8x32xf32>, vector<8x8xf32> -> vector<8x8xf32>
    %c0_4 = arith.constant 0 : index
    %c0_5 = arith.constant 0 : index
    %6 = vector.load %arg4[%c0_4, %c0_5] : memref<1x8xi32, #tpu.memory_space<vmem>>, vector<1x8xi32>
    %c0_6 = arith.constant 0 : index
    %c0_7 = arith.constant 0 : index
    %7 = vector.load %arg5[%c0_6, %c0_7] : memref<8x1xi32, #tpu.memory_space<vmem>>, vector<8x1xi32>
    %8 = vector.broadcast %7 : vector<8x1xi32> to vector<8x8xi32>
    %9 = vector.broadcast %6 : vector<1x8xi32> to vector<8x8xi32>
    %10 = arith.cmpi eq, %8, %9 : vector<8x8xi32>
    %c8_i32 = arith.constant 8 : i32
    %11 = arith.muli %arg1, %c8_i32 : i32
    %12 = tpu.iota {dimensions = array<i32: 0>} : vector<8x1xi32>
    %13 = vector.broadcast %11 : i32 to vector<8x1xi32>
    %14 = arith.addi %13, %12 : vector<8x1xi32>
    %c8_i32_8 = arith.constant 8 : i32
    %15 = vector.broadcast %c8_i32_8 : i32 to vector<8x1xi32>
    %16 = arith.cmpi slt, %14, %15 : vector<8x1xi32>
    %17 = vector.broadcast %16 : vector<8x1xi1> to vector<8x8xi1>
    %18 = arith.andi %10, %17 : vector<8x8xi1>
    %c0_9 = arith.constant 0 : index
    %c0_10 = arith.constant 0 : index
    %19 = vector.load %arg7[%c0_9, %c0_10] : memref<1x8xf32, #tpu.memory_space<vmem>>, vector<1x8xf32>
    %cst_11 = arith.constant 1.000000e+30 : f32
    %20 = vector.broadcast %cst_11 : f32 to vector<8x8xf32>
    %21 = arith.select %18, %5, %20 : vector<8x8xi1>, vector<8x8xf32>
    %cst_12 = arith.constant dense<0x7F800000> : vector<8xf32>
    %22 = vector.multi_reduction <minimumf>, %21, %cst_12 [0] : vector<8x8xf32> to vector<8xf32>
    %23 = vector.shape_cast %22 : vector<8xf32> to vector<1x8xf32>
    %24 = arith.minimumf %19, %23 : vector<1x8xf32>
    %c0_13 = arith.constant 0 : index
    %c0_14 = arith.constant 0 : index
    %25 = vector.load %arg7[%c0_13, %c0_14] : memref<1x8xf32, #tpu.memory_space<vmem>>, vector<1x8xf32>
    tpu.vector_store %arg7[%c0_13, %c0_14], %24 {strides = array<i32>} : memref<1x8xf32, #tpu.memory_space<vmem>>, vector<1x8xf32>,
    %cst_15 = arith.constant dense<true> : vector<8x8xi1>
    %26 = arith.xori %10, %cst_15 : vector<8x8xi1>
    %27 = vector.broadcast %16 : vector<8x1xi1> to vector<8x8xi1>
    %28 = arith.andi %26, %27 : vector<8x8xi1>
    %cst_16 = arith.constant -1.000000e+30 : f32
    %29 = vector.broadcast %cst_16 : f32 to vector<8x8xf32>
    %30 = arith.select %28, %5, %29 : vector<8x8xi1>, vector<8x8xf32>
    %c0_17 = arith.constant 0 : index
    %c0_18 = arith.constant 0 : index
    %31 = vector.load %arg8[%c0_17, %c0_18] : memref<1x8xf32, #tpu.memory_space<vmem>>, vector<1x8xf32>
    %cst_19 = arith.constant dense<0xFF800000> : vector<8xf32>
    %32 = vector.multi_reduction <maximumf>, %30, %cst_19 [0] : vector<8x8xf32> to vector<8xf32>
    %33 = vector.shape_cast %32 : vector<8xf32> to vector<1x8xf32>
    %34 = arith.maximumf %31, %33 : vector<1x8xf32>
    %35 = vector.broadcast %34 : vector<1x8xf32> to vector<8x8xf32>
    %36 = arith.subf %30, %35 : vector<8x8xf32>
    %37 = math.exp %36 : vector<8x8xf32>
    %cst_20 = arith.constant 0.000000e+00 : f32
    %38 = vector.broadcast %cst_20 : f32 to vector<8x8xf32>
    %39 = arith.select %28, %37, %38 : vector<8x8xi1>, vector<8x8xf32>
    %c0_21 = arith.constant 0 : index
    %c0_22 = arith.constant 0 : index
    %40 = vector.load %arg9[%c0_21, %c0_22] : memref<1x8xf32, #tpu.memory_space<vmem>>, vector<1x8xf32>
    %41 = arith.subf %31, %34 : vector<1x8xf32>
    %42 = math.exp %41 : vector<1x8xf32>
    %43 = arith.mulf %40, %42 : vector<1x8xf32>
    %cst_23 = arith.constant dense<0.000000e+00> : vector<8xf32>
    %44 = vector.multi_reduction <add>, %39, %cst_23 [0] : vector<8x8xf32> to vector<8xf32>
    %45 = vector.shape_cast %44 : vector<8xf32> to vector<1x8xf32>
    %46 = arith.addf %43, %45 : vector<1x8xf32>
    %c0_24 = arith.constant 0 : index
    %c0_25 = arith.constant 0 : index
    %47 = vector.load %arg9[%c0_24, %c0_25] : memref<1x8xf32, #tpu.memory_space<vmem>>, vector<1x8xf32>
    tpu.vector_store %arg9[%c0_24, %c0_25], %46 {strides = array<i32>} : memref<1x8xf32, #tpu.memory_space<vmem>>, vector<1x8xf32>,
    %c0_26 = arith.constant 0 : index
    %c0_27 = arith.constant 0 : index
    %48 = vector.load %arg8[%c0_26, %c0_27] : memref<1x8xf32, #tpu.memory_space<vmem>>, vector<1x8xf32>
    tpu.vector_store %arg8[%c0_26, %c0_27], %34 {strides = array<i32>} : memref<1x8xf32, #tpu.memory_space<vmem>>, vector<1x8xf32>,
    %c0_i32_28 = arith.constant 0 : i32
    %49 = arith.cmpi eq, %arg1, %c0_i32_28 : i32
    %50 = arith.extui %49 : i1 to i32
    %c0_i32_29 = arith.constant 0 : i32
    %51 = arith.cmpi ne, %50, %c0_i32_29 : i32
    scf.if %51 {
      %c0_30 = arith.constant 0 : index
      %c0_31 = arith.constant 0 : index
      %52 = vector.load %arg7[%c0_30, %c0_31] : memref<1x8xf32, #tpu.memory_space<vmem>>, vector<1x8xf32>
      %c0_32 = arith.constant 0 : index
      %c0_33 = arith.constant 0 : index
      %53 = vector.load %arg8[%c0_32, %c0_33] : memref<1x8xf32, #tpu.memory_space<vmem>>, vector<1x8xf32>
      %54 = arith.maximumf %53, %52 : vector<1x8xf32>
      %55 = arith.subf %52, %54 : vector<1x8xf32>
      %56 = math.exp %55 : vector<1x8xf32>
      %c0_34 = arith.constant 0 : index
      %c0_35 = arith.constant 0 : index
      %57 = vector.load %arg9[%c0_34, %c0_35] : memref<1x8xf32, #tpu.memory_space<vmem>>, vector<1x8xf32>
      %c0_36 = arith.constant 0 : index
      %c0_37 = arith.constant 0 : index
      %58 = vector.load %arg8[%c0_36, %c0_37] : memref<1x8xf32, #tpu.memory_space<vmem>>, vector<1x8xf32>
      %59 = arith.subf %58, %54 : vector<1x8xf32>
      %60 = math.exp %59 : vector<1x8xf32>
      %61 = arith.mulf %57, %60 : vector<1x8xf32>
      %62 = arith.addf %56, %61 : vector<1x8xf32>
      %63 = math.log %62 : vector<1x8xf32>
      %64 = arith.addf %54, %63 : vector<1x8xf32>
      %65 = arith.subf %64, %52 : vector<1x8xf32>
      %66 = vector.shape_cast %65 : vector<1x8xf32> to vector<1x1x8xf32>
      %c0_38 = arith.constant 0 : index
      %c0_39 = arith.constant 0 : index
      %c0_40 = arith.constant 0 : index
      %67 = vector.load %arg6[%c0_38, %c0_39, %c0_40] : memref<1x1x8xf32, #tpu.memory_space<vmem>>, vector<1x1x8xf32>
      tpu.vector_store %arg6[%c0_38, %c0_39, %c0_40], %66 {strides = array<i32>} : memref<1x1x8xf32, #tpu.memory_space<vmem>>, vector<1x1x8xf32>,
    } else {
    }
    return
  }
  func.func @transform_0(%arg0: i32, %arg1: i32) -> (i32, i32) {
    %c0_i32 = arith.constant 0 : i32
    %c0_i32_0 = arith.constant 0 : i32
    return %arg0, %c0_i32 : i32, i32
  }
  func.func @transform_1(%arg0: i32, %arg1: i32) -> (i32, i32) {
    %c0_i32 = arith.constant 0 : i32
    %c0_i32_0 = arith.constant 0 : i32
    return %arg1, %c0_i32 : i32, i32
  }
  func.func @transform_2(%arg0: i32, %arg1: i32) -> (i32, i32) {
    %c0_i32 = arith.constant 0 : i32
    %c0_i32_0 = arith.constant 0 : i32
    return %c0_i32, %arg0 : i32, i32
  }
  func.func @transform_3(%arg0: i32, %arg1: i32) -> (i32, i32) {
    %c0_i32 = arith.constant 0 : i32
    %c0_i32_0 = arith.constant 0 : i32
    return %arg1, %c0_i32 : i32, i32
  }
  func.func @transform_4(%arg0: i32, %arg1: i32) -> (i32, i32, i32) {
    %c0_i32 = arith.constant 0 : i32
    %c0_i32_0 = arith.constant 0 : i32
    %c0_i32_1 = arith.constant 0 : i32
    return %arg0, %c0_i32, %c0_i32_0 : i32, i32, i32
  }
}

</mosaic_0001>

<bundles_post_ra>
// kernel: tpu_custom_call.1
= control target key start
LH: loop header
LB: loop body
LE: loop exit
PB: predicated region body
PF: predicated region fallthrough
CT: control target
= control target key end

     0   :  { %9 = vsyncpa [#allocation6], 0  ;;  %s360_s0 = inlined_call_operand.vmem [shape: f32[8,32], index: 0, kind: input, shape index: {}]   ;;  %s361_s1 = inlined_call_operand.hbm [shape: f32[8,32], index: 1, kind: input, shape index: {}]   ;;  %s362_s2 = inlined_call_operand.vmem [shape: s32[1,8], index: 2, kind: input, shape index: {}]   ;;  %s363_s3 = inlined_call_operand.vmem [shape: s32[8,1], index: 3, kind: input, shape index: {}]   ;;  %s364_s4 = inlined_call_operand.hbm [shape: f32[1,1,8], index: 4, kind: output, shape index: {}]  }
   0x1   :  { %10 = vsyncpa [#allocation7], 0  ;;  %s294_s15 = smov [#allocation5]  }
   0x2   :  { %s19_s16 = sshll.u32 %s294_s15, 4  ;;  %s20_s16 = int_to_ptr.vmem [resolvable:$true] %s19_s16 }
   0x3   :  { %s258_s17 = scalar_lea.vmem %s20_s16, 128  ;;  %p263_p1 = scmp.lt.s32.totalorder %s20_s16, %s20_s16 }
   0x4   :  { %p259_p0 = scmp.ne.s32.totalorder %s20_s16, %s258_s17  ;;  %p264_p2 = scmp.lt.s32.totalorder %s258_s17, %s258_s17 }
   0x6   :  { %p265_p3 = por %p264_p2, %p263_p1 }
   0x8   :  { %p266_p4 = pnand %p265_p3, %p259_p0 }
   0xa   :  { %269 = shalt.err (!%p266_p4)
}
   0xb   :  { %22 = dma.hbm_to_vmem [thread:$0]  %s361_s1, 128, %s20_s16, [#allocation6]  }
   0xc   :  { %290 = dma.done.wait [#allocation6], 128  }
   0xd   :  { %291 = vsyncadd [#allocation6], 4294967168  ;;  %vm34_vm0 = vcmask 57344   ;;  %v295_v0 = vmov 0.0   ;;  %vm296_vm1 = vmmov 0   ;;  %v297_v1 = vmov 0  }
   0xe   :  { %37 = vst.msk [vmem:[#allocation4] sm:$0x1] %vm34_vm0, %v295_v0  ;;  %226 = vmatprep.subr.mxu0 %v295_v0  ;;  %228 = vmatprep.mubr.msk.f32.mxu0 %vm296_vm1, %v295_v0  ;;  %vm40_vm2 = vcmask 261120   ;;  %v298_v2 = vmov 1e+30   ;;  %v38_v4 = vld [vmem:[%s360_s0] sm:$0xff]  ;;  %v162_v20 = vlaneseq }
   0xf   :  { %239 = vset.pattern.permute.xlu0 %v297_v1  ;;  %35 = vst.msk [vmem:[#allocation2] sm:$0x1] %vm34_vm0, %v298_v2  ;;  %v299_v3 = vmov -1e+30   ;;  %v118_v5 = vld [vmem:[%s363_s3] sm:$0xff]  ;;  %227 = vmatpush3.xpose.msk.msra.mxu0 %vm40_vm2, %v38_v4  ;;  %vm300_vm4 = vmmov 1  }
  0x10   :  { %36 = vst.msk [vmem:[#allocation3] sm:$0x1] %vm34_vm0, %v299_v3  ;;  %v39_v6 = vld [vmem:[#allocation5] sm:$0xff]  ;;  %120 = vperm.xlu0 %239, %v118_v5   ;;  %v223_v8 = vld [vmem:[%s362_s2] ss:$0 sm:$0xff]  ;;  %vm138_vm6 = vcmask 64512  }
  0x11   :  { %v163_v25 = vshrl.u32 %v162_v20, 7  ;;  %s301_s0 = smov [#allocation8]  }
  0x12   :  { %229 = vmatmul.mubr.msk.f32.vlgmr.msra.gmra.mxu0 %vm40_vm2, %v39_v6  ;;  %s212_s2 = sshll.u32 %s301_s0, 4  ;;  %s213_s2 = int_to_ptr.vmem [resolvable:$true] %s212_s2 }
  0x13   :  { %v164_v32 = vsub.s32 0, %v163_v25  ;;  %s270_s3 = scalar_lea.vmem %s213_s2, 16  ;;  %s274_s25 = scalar_lea.vmem %s213_s2, 32 }
  0x14   :  { %p271_p5 = scmp.ne.s32.totalorder %s213_s2, %s270_s3  ;;  %p275_p6 = scmp.lt.s32.totalorder %s213_s2, %s213_s2 }
  0x15   :  { %v171_v55 = vld [vmem:[#allocation4] sm:$0x1]  ;;  %p276_p7 = scmp.lt.s32.totalorder %s274_s25, %s270_s3 }
  0x16   :  { %v136_v28 = vld [vmem:[#allocation2] sm:$0x1] }
  0x17   :  { %v152_v29 = vld [vmem:[#allocation3] sm:$0x1]  ;;  %p277_p8 = por %p276_p7, %p275_p6 }
  0x19   :  { %p278_p9 = pnand %p277_p8, %p271_p5 }
  0x8b   :  { %v121_v7 = vpop.permute.xlu0 %120 }
  0x8c   :  { %vm126_vm3 = vcmp.eq.s32.totalorder %v121_v7, %v223_v8 }
  0x8d   :  { %vm342_vm5 = vmxor %vm126_vm3, %vm300_vm4 }
  0xd2   :  { %v113_v10 = vpop.f32.mrf.mxu0 }
  0xd3   :  { %v137_v11 = vsel %vm126_vm3, %v113_v10, 1e+30  ;;  %v151_v12 = vsel %vm342_vm5, %v113_v10, -1e+30 }
  0xd4   :  { %v139_v13 = vsel %vm138_vm6, %v137_v11, inf  ;;  %v153_v14 = vsel %vm138_vm6, %v151_v12, -inf  ;;  %v230_v15 = vpop.f32.mrf.mxu0 }
  0xd5   :  { %v140_v16 = vrot.slane %v139_v13, 4  ;;  %v154_v17 = vrot.slane %v153_v14, 4 }
  0xd7   :  { %v141_v18 = vmin.f32 %v139_v13, %v140_v16  ;;  %v155_v19 = vmax.f32 %v153_v14, %v154_v17 }
  0xd9   :  { %v142_v21 = vrot.slane %v141_v18, 2  ;;  %v156_v22 = vrot.slane %v155_v19, 2 }
  0xdb   :  { %v143_v23 = vmin.f32 %v141_v18, %v142_v21  ;;  %v157_v24 = vmax.f32 %v155_v19, %v156_v22 }
  0xdd   :  { %v144_v26 = vrot.slane %v143_v23, 1  ;;  %v158_v27 = vrot.slane %v157_v24, 1 }
  0xdf   :  { %v145_v30 = vmin.f32 %v143_v23, %v144_v26  ;;  %v159_v31 = vmax.f32 %v157_v24, %v158_v27 }
  0xe1   :  { %v146_v33 = vmin.f32 %v136_v28, %v145_v30  ;;  %v160_v34 = vmax.f32 %v152_v29, %v159_v31 }
  0xe3   :  { %148 = vst.msk [vmem:[#allocation2] sm:$0x1] %vm34_vm0, %v146_v33  ;;  %v165_v35 = vrot.slane %v160_v34, %v164_v32  ;;  %185 = vst.msk [vmem:[#allocation3] sm:$0x1] %vm34_vm0, %v160_v34  ;;  %v172_v38 = vsub.f32 %v152_v29, %v160_v34 }
  0xe5   :  { %v167_v36 = vsub.f32 %v151_v12, %v165_v35  ;;  %v173_v39 = vmul.f32 1.442695, %v172_v38 }
  0xe7   :  { %v168_v37 = vmul.f32 1.442695, %v167_v36 }
  0xe9   :  { %240 = vpow2.f32 %v168_v37 }
  0xea   :  { %v189_v40 = vld [vmem:[#allocation2] sm:$0x1]  ;;  %v190_v41 = vld [vmem:[#allocation3] sm:$0x1]  ;;  %242 = vpow2.f32 %v173_v39 }
  0xeb   :  { %v191_v42 = vmax.f32 %v190_v41, %v189_v40 }
  0xed   :  { %v196_v47 = vsub.f32 %v190_v41, %v191_v42  ;;  %v192_v49 = vsub.f32 %v189_v40, %v191_v42 }
  0xef   :  { %v197_v51 = vmul.f32 1.442695, %v196_v47  ;;  %v193_v53 = vmul.f32 1.442695, %v192_v49 }
  0xf1   :  { %244 = vpow2.f32 %v197_v51 }
  0xf2   :  { %246 = vpow2.f32 %v193_v53 }
  0xf6   :  { %v241_v43 = vpop.eup %240 }
  0xf7   :  { %v170_v44 = vsel %vm342_vm5, %v241_v43, 0.0  ;;  %v243_v54 = vpop.eup %242 }
  0xf8   :  { %v176_v45 = vsel %vm138_vm6, %v170_v44, 0.0  ;;  %v175_v57 = vmul.f32 %v243_v54, %v171_v55 }
  0xf9   :  { %v177_v46 = vrot.slane %v176_v45, 4 }
  0xfb   :  { %v178_v48 = vadd.f32 %v177_v46, %v176_v45 }
  0xfd   :  { %v179_v50 = vrot.slane %v178_v48, 2 }
  0xfe   :  { %v245_v60 = vpop.eup %244 }
  0xff   :  { %v180_v52 = vadd.f32 %v179_v50, %v178_v48  ;;  %v247_v63 = vpop.eup %246 }
 0x101   :  { %v181_v56 = vrot.slane %v180_v52, 1 }
 0x103   :  { %v182_v58 = vadd.f32 %v181_v56, %v180_v52 }
 0x105   :  { %v183_v59 = vadd.f32 %v182_v58, %v175_v57 }
 0x107   :  { %184 = vst.msk [vmem:[#allocation4] sm:$0x1] %vm34_vm0, %v183_v59 }
 0x10e   :  { %v195_v61 = vld [vmem:[#allocation4] sm:$0x1] }
 0x10f   :  { %v199_v62 = vmul.f32 %v245_v60, %v195_v61 }
 0x111   :  { %v200_v0 = vadd.f32 %v247_v63, %v199_v62 }
 0x113   :  { %248 = vlog2.f32 %v200_v0 }
 0x120   :  { %v249_v1 = vpop.eup %248 }
 0x121   :  { %v202_v2 = vmul.f32 0.6931472, %v249_v1 }
 0x123   :  { %v203_v3 = vadd.f32 %v202_v2, %v191_v42 }
 0x125   :  { %v204_v4 = vsub.f32 %v203_v3, %v189_v40 }
 0x127   :  { %205 = vst.msk [vmem:[#allocation8] sm:$0x1] %vm34_vm0, %v204_v4 }
 0x128   :  { %281 = shalt.err (!%p278_p9)
}
 0x129   :  { %215 = dma.vmem_to_hbm [thread:$0]  %s213_s2, 16, %s364_s4, [#allocation7]  }
 0x12a   :  { %292 = dma.done.wait [#allocation7], 16  }
 0x12b   :  { %293 = vsyncadd [#allocation7], 4294967280 }
 0x12c   :  { %219 = vsyncpa [#allocation6], 1 }
 0x12d   :  { %220 = vsyncpa [#allocation7], 1 }

</bundles_post_ra>
